<compile_context>
chip_gen: v7x
topology: tpu7x:2x2x1
jax: 0.10.0
libtpu: 0.0.40
codegen_flags: <defaults>
</compile_context>

<pallas_src>
import functools

import jax
import jax.numpy as jnp
from jax.experimental import pallas as pl
from jax.experimental.pallas import tpu as pltpu


_VMEM_TARGET_BYTES = 40 * 1024 * 1024     # total tile budget (inputs x2 bufs + outputs)
_VMEM_LIMIT_CAP = 48 * 1024 * 1024        # keep headroom on v7x (64 MiB VMEM / TC)
_MAX_BLOCK_ROWS = 16384                   # per-step latency sanity cap


def _round_up(a, b):
    return (a + b - 1) // b * b


def _sublane(itemsize):
    # Sublane packing: 8 rows for 4-byte, 16 for 2-byte, 32 for 1-byte dtypes.
    return max(8, 32 // max(int(itemsize), 1))


def _vmem_bytes(tm, c, item_x, item_t):
    """Estimated VMEM: double-buffered inputs + lane-padded per-row/CE outputs."""
    cpad = _round_up(max(c, 1), 128)
    in_bytes = 2 * tm * cpad * item_x + 2 * tm * cpad * item_t
    out_bytes = 2 * tm * 128 * 4 + 2 * 8 * 128 * 4
    return in_bytes + out_bytes


def _auto_block_rows(n, c, item_x, item_t, sub):
    """Largest row tile whose full VMEM footprint fits the ~40 MiB budget."""
    cpad = _round_up(max(c, 1), 128)
    per_row = 2 * cpad * (item_x + item_t) + 2 * 128 * 4   # incl. (tm,1) out blocks
    tm = _VMEM_TARGET_BYTES // per_row
    tm = max(sub, (tm // sub) * sub)
    tm = min(tm, _MAX_BLOCK_ROWS)
    return min(tm, _round_up(n, sub))


def _poly1_ce_pt_kernel(x_ref, t_ref, ce_ref, pre_ref, *,
                        epsilon, n_rows, tiles_per_shard, ragged):
    """Per (shard, tile): eps*(1-pt) rows -> pre_ref, per-shard CE sum -> ce_ref."""
    p = pl.program_id(0)          # shard ("parallel": split across TCs on v7x)
    j = pl.program_id(1)          # tile within shard ("arbitrary": CE reduction)

    @pl.when(j == 0)
    def _init():
        ce_ref[...] = jnp.zeros_like(ce_ref)

    x = x_ref[...].astype(jnp.float32)          # (TM, C) logits (native dtype in HBM)
    t = t_ref[...].astype(jnp.float32)          # (TM, C) target probabilities

    if ragged:
        # Tail handling without any HBM pad copy: rows >= N are garbage from the
        # partial edge DMA, so mask BOTH x and t (VPU selects; kernel is HBM-bound).
        tm = x_ref.shape[0]
        row0 = (p * tiles_per_shard + j) * tm
        rows = jax.lax.broadcasted_iota(jnp.int32, (tm, 1), 0) + row0
        valid = rows < n_rows
        x = jnp.where(valid, x, 0.0)
        t = jnp.where(valid, t, 0.0)

    # Stable row-wise logsumexp (exp/log on EUP, row reductions on XLU).
    m = jnp.max(x, axis=-1, keepdims=True)
    lse = m + jnp.log(jnp.sum(jnp.exp(x - m), axis=-1, keepdims=True))

    tx = jnp.sum(t * x, axis=-1, keepdims=True)       # (TM, 1)  == pt per row
    t_sum = jnp.sum(t, axis=-1, keepdims=True)        # (TM, 1)

    # -sum_c t*log_softmax(x) = lse*sum(t) - sum(t*x); masked rows give exactly 0.
    ce_ref[...] += jnp.sum(lse * t_sum - tx)

    one_minus_pt = 1.0 - tx
    pre_ref[...] = one_minus_pt if epsilon == 1.0 else epsilon * one_minus_pt


def poly1_cross_entropy(y_pred, y_true, *, epsilon=1.0, block_rows=None):
    """JAX/Pallas equivalent of poly1_cross_entropy(epsilon)(y_pred, y_true)."""
    assert y_pred.shape == y_true.shape and y_pred.ndim == 2, (
        "expected (N, C) logits and same-shape probability targets")
    n, c = y_pred.shape

    item_x = jnp.dtype(y_pred.dtype).itemsize
    item_t = jnp.dtype(y_true.dtype).itemsize
    sub = max(_sublane(item_x), _sublane(item_t))

    tm_max = _auto_block_rows(n, c, item_x, item_t, sub)
    if block_rows is None:
        tm = tm_max
    else:
        tm = max(sub, (int(block_rows) // sub) * sub)
        tm = min(tm, tm_max)

    n_tiles = pl.cdiv(n, tm)
    if block_rows is None and n_tiles > 1 and n_tiles % 2 == 1:
        # Prefer an even tile count so the leading "parallel" axis can use both
        # TensorCores on dual-core parts (v7x); shrink the tile to the next even split.
        tm_alt = _round_up(pl.cdiv(n, n_tiles + 1), sub)
        if pl.cdiv(n, tm_alt) % 2 == 0:
            tm = tm_alt
            n_tiles = pl.cdiv(n, tm)
    num_shards = 2 if (n_tiles >= 2 and n_tiles % 2 == 0) else 1
    tiles_per_shard = n_tiles // num_shards
    ragged = (n % tm) != 0

    vmem_est = _vmem_bytes(tm, c, item_x, item_t)
    vmem_limit = int(min(max(vmem_est + (8 << 20), 32 << 20), _VMEM_LIMIT_CAP))

    kernel = functools.partial(
        _poly1_ce_pt_kernel, epsilon=float(epsilon), n_rows=n,
        tiles_per_shard=tiles_per_shard, ragged=ragged)

    ce_parts, pre = pl.pallas_call(
        kernel,
        out_shape=(
            jax.ShapeDtypeStruct((num_shards, 1, 1), jnp.float32),   # per-shard CE sums
            jax.ShapeDtypeStruct((n_tiles * tm, 1), jnp.float32),    # eps*(1-pt) per row
        ),
        grid=(num_shards, tiles_per_shard),
        in_specs=[
            pl.BlockSpec((tm, c), lambda p, j: (p * tiles_per_shard + j, 0)),
            pl.BlockSpec((tm, c), lambda p, j: (p * tiles_per_shard + j, 0)),
        ],
        out_specs=(
            pl.BlockSpec((1, 1, 1), lambda p, j: (p, 0, 0)),          # resident per shard
            pl.BlockSpec((tm, 1), lambda p, j: (p * tiles_per_shard + j, 0)),
        ),
        compiler_params=pltpu.CompilerParams(
            dimension_semantics=("parallel", "arbitrary"),
            vmem_limit_bytes=vmem_limit,
        ),
    )(y_pred, y_true)

    # Trivial O(N) finalize: scalar mean CE + per-row eps*(1-pt) (XLA fuses this).
    ce_mean = jnp.sum(ce_parts) * (1.0 / float(n))
    return ce_mean + pre[:n, 0]


def _poly1_cross_entropy_ref(y_pred, y_true, *, epsilon=1.0):
    x = y_pred.astype(jnp.float32)
    t = y_true.astype(jnp.float32)
    logp = jax.nn.log_softmax(x, axis=-1)
    ce = jnp.mean(-jnp.sum(t * logp, axis=-1))
    pt = jnp.sum(x * t, axis=-1)
    return ce + epsilon * (1.0 - pt)


if __name__ == "__main__":
    key = jax.random.PRNGKey(0)
    k1, k2, k3 = jax.random.split(key, 3)

    batch, num_classes = 64, 32
    y_pred = jax.random.normal(k1, (batch, num_classes), jnp.float32)
    labels = jax.random.randint(k2, (batch,), 0, num_classes)
    y_true = jax.nn.one_hot(labels, num_classes, dtype=jnp.float32)

    ref = _poly1_cross_entropy_ref(y_pred, y_true, epsilon=1.0)

    # Default (single-tile) path.
    out = jax.block_until_ready(poly1_cross_entropy(y_pred, y_true, epsilon=1.0))
    assert out.shape == (batch,)
    assert jnp.allclose(out, ref, atol=1e-4, rtol=1e-5), (
        f"mismatch: max abs err {jnp.max(jnp.abs(out - ref))}")

    # Multi-tile + dual-shard path: 4 tiles -> 2 "parallel" shards x 2 tiles each.
    out_tiled = jax.block_until_ready(
        poly1_cross_entropy(y_pred, y_true, epsilon=1.0, block_rows=16))
    assert jnp.allclose(out_tiled, ref, atol=1e-4, rtol=1e-5), (
        f"mismatch (tiled): max abs err {jnp.max(jnp.abs(out_tiled - ref))}")

    # Ragged path: 3 tiles of 24 rows -> last tile masked in-kernel (no jnp.pad).
    out_ragged = jax.block_until_ready(
        poly1_cross_entropy(y_pred, y_true, epsilon=1.0, block_rows=24))
    assert jnp.allclose(out_ragged, ref, atol=1e-4, rtol=1e-5), (
        f"mismatch (ragged): max abs err {jnp.max(jnp.abs(out_ragged - ref))}")

    # Soft (non-one-hot) probability targets.
    t_soft = jax.nn.softmax(jax.random.normal(k3, (batch, num_classes)), axis=-1)
    out_soft = jax.block_until_ready(poly1_cross_entropy(y_pred, t_soft))
    ref_soft = _poly1_cross_entropy_ref(y_pred, t_soft)
    assert jnp.allclose(out_soft, ref_soft, atol=1e-4, rtol=1e-5), (
        f"mismatch (soft): max abs err {jnp.max(jnp.abs(out_soft - ref_soft))}")

    # Native bf16 streaming (no wrapper upcast; f32 math inside the kernel).
    yp16 = y_pred.astype(jnp.bfloat16)
    yt16 = y_true.astype(jnp.bfloat16)
    out_bf16 = jax.block_until_ready(
        poly1_cross_entropy(yp16, yt16, epsilon=1.0, block_rows=16))
    ref_bf16 = _poly1_cross_entropy_ref(yp16, yt16, epsilon=1.0)
    assert jnp.allclose(out_bf16, ref_bf16, atol=1e-3, rtol=1e-3), (
        f"mismatch (bf16): max abs err {jnp.max(jnp.abs(out_bf16 - ref_bf16))}")

    print("KERNEL_OK")
</pallas_src>

<mosaic_0001>
module attributes {stable_mosaic.version = 11 : i64} {
  func.func @_poly1_ce_pt_kernel(%arg0: i32, %arg1: i32, %arg2: memref<64x32xf32, #tpu.memory_space<vmem>>, %arg3: memref<64x32xf32, #tpu.memory_space<vmem>>, %arg4: memref<1x1x1xf32, #tpu.memory_space<vmem>>, %arg5: memref<64x1xf32, #tpu.memory_space<vmem>>) attributes {dimension_semantics = [#tpu.dimension_semantics<parallel>, #tpu.dimension_semantics<arbitrary>], iteration_bounds = array<i64: 1, 1>, scalar_prefetch = 0 : i64, scratch_operands = 0 : i64, tpu.core_type = #tpu.core_type<tc>, window_params = [{transform_indices = @transform_0, window_bounds = array<i64: 64, 32>}, {transform_indices = @transform_1, window_bounds = array<i64: 64, 32>}, {transform_indices = @transform_2, window_bounds = array<i64: 1, 1, 1>}, {transform_indices = @transform_3, window_bounds = array<i64: 64, 1>}]} {
    %c0_i32 = arith.constant 0 : i32
    %0 = arith.cmpi eq, %arg1, %c0_i32 : i32
    %1 = arith.extui %0 : i1 to i32
    %c0_i32_0 = arith.constant 0 : i32
    %2 = arith.cmpi ne, %1, %c0_i32_0 : i32
    scf.if %2 {
      %cst_17 = arith.constant 0.000000e+00 : f32
      %32 = vector.broadcast %cst_17 : f32 to vector<1x1x1xf32>
      %c0_18 = arith.constant 0 : index
      %c0_19 = arith.constant 0 : index
      %c0_20 = arith.constant 0 : index
      %33 = vector.load %arg4[%c0_18, %c0_19, %c0_20] : memref<1x1x1xf32, #tpu.memory_space<vmem>>, vector<1x1x1xf32>
      tpu.vector_store %arg4[%c0_18, %c0_19, %c0_20], %32 {strides = array<i32>} : memref<1x1x1xf32, #tpu.memory_space<vmem>>, vector<1x1x1xf32>,
    } else {
    }
    %c0 = arith.constant 0 : index
    %c0_1 = arith.constant 0 : index
    %3 = vector.load %arg2[%c0, %c0_1] : memref<64x32xf32, #tpu.memory_space<vmem>>, vector<64x32xf32>
    %c0_2 = arith.constant 0 : index
    %c0_3 = arith.constant 0 : index
    %4 = vector.load %arg3[%c0_2, %c0_3] : memref<64x32xf32, #tpu.memory_space<vmem>>, vector<64x32xf32>
    %cst = arith.constant dense<0xFF800000> : vector<64xf32>
    %5 = vector.multi_reduction <maximumf>, %3, %cst [1] : vector<64x32xf32> to vector<64xf32>
    %6 = vector.shape_cast %5 : vector<64xf32> to vector<64x1xf32>
    %7 = vector.broadcast %6 : vector<64x1xf32> to vector<64x32xf32>
    %8 = arith.subf %3, %7 : vector<64x32xf32>
    %9 = math.exp %8 : vector<64x32xf32>
    %cst_4 = arith.constant dense<0.000000e+00> : vector<64xf32>
    %10 = vector.multi_reduction <add>, %9, %cst_4 [1] : vector<64x32xf32> to vector<64xf32>
    %11 = vector.shape_cast %10 : vector<64xf32> to vector<64x1xf32>
    %12 = math.log %11 : vector<64x1xf32>
    %13 = arith.addf %6, %12 : vector<64x1xf32>
    %14 = arith.mulf %4, %3 : vector<64x32xf32>
    %cst_5 = arith.constant dense<0.000000e+00> : vector<64xf32>
    %15 = vector.multi_reduction <add>, %14, %cst_5 [1] : vector<64x32xf32> to vector<64xf32>
    %16 = vector.shape_cast %15 : vector<64xf32> to vector<64x1xf32>
    %cst_6 = arith.constant dense<0.000000e+00> : vector<64xf32>
    %17 = vector.multi_reduction <add>, %4, %cst_6 [1] : vector<64x32xf32> to vector<64xf32>
    %18 = vector.shape_cast %17 : vector<64xf32> to vector<64x1xf32>
    %c0_7 = arith.constant 0 : index
    %c0_8 = arith.constant 0 : index
    %c0_9 = arith.constant 0 : index
    %19 = vector.load %arg4[%c0_7, %c0_8, %c0_9] : memref<1x1x1xf32, #tpu.memory_space<vmem>>, vector<1x1x1xf32>
    %20 = arith.mulf %13, %18 : vector<64x1xf32>
    %21 = arith.subf %20, %16 : vector<64x1xf32>
    %22 = vector.shape_cast %21 : vector<64x1xf32> to vector<1x64x1xf32>
    %cst_10 = arith.constant dense<0.000000e+00> : vector<1xf32>
    %23 = vector.multi_reduction <add>, %22, %cst_10 [1, 2] : vector<1x64x1xf32> to vector<1xf32>
    %24 = vector.shape_cast %23 : vector<1xf32> to vector<1x1x1xf32>
    %25 = vector.extract %24[0, 0, 0] : f32 from vector<1x1x1xf32>
    %26 = vector.broadcast %25 : f32 to vector<1x1x1xf32>
    %27 = arith.addf %19, %26 : vector<1x1x1xf32>
    %c0_11 = arith.constant 0 : index
    %c0_12 = arith.constant 0 : index
    %c0_13 = arith.constant 0 : index
    %28 = vector.load %arg4[%c0_11, %c0_12, %c0_13] : memref<1x1x1xf32, #tpu.memory_space<vmem>>, vector<1x1x1xf32>
    tpu.vector_store %arg4[%c0_11, %c0_12, %c0_13], %27 {strides = array<i32>} : memref<1x1x1xf32, #tpu.memory_space<vmem>>, vector<1x1x1xf32>,
    %cst_14 = arith.constant 1.000000e+00 : f32
    %29 = vector.broadcast %cst_14 : f32 to vector<64x1xf32>
    %30 = arith.subf %29, %16 : vector<64x1xf32>
    %c0_15 = arith.constant 0 : index
    %c0_16 = arith.constant 0 : index
    %31 = vector.load %arg5[%c0_15, %c0_16] : memref<64x1xf32, #tpu.memory_space<vmem>>, vector<64x1xf32>
    tpu.vector_store %arg5[%c0_15, %c0_16], %30 {strides = array<i32>} : memref<64x1xf32, #tpu.memory_space<vmem>>, vector<64x1xf32>,
    return
  }
  func.func @transform_0(%arg0: i32, %arg1: i32) -> (i32, i32) {
    %c1_i32 = arith.constant 1 : i32
    %0 = arith.muli %arg0, %c1_i32 : i32
    %1 = arith.addi %0, %arg1 : i32
    %c0_i32 = arith.constant 0 : i32
    %c0_i32_0 = arith.constant 0 : i32
    return %1, %c0_i32 : i32, i32
  }
  func.func @transform_1(%arg0: i32, %arg1: i32) -> (i32, i32) {
    %c1_i32 = arith.constant 1 : i32
    %0 = arith.muli %arg0, %c1_i32 : i32
    %1 = arith.addi %0, %arg1 : i32
    %c0_i32 = arith.constant 0 : i32
    %c0_i32_0 = arith.constant 0 : i32
    return %1, %c0_i32 : i32, i32
  }
  func.func @transform_2(%arg0: i32, %arg1: i32) -> (i32, i32, i32) {
    %c0_i32 = arith.constant 0 : i32
    %c0_i32_0 = arith.constant 0 : i32
    %c0_i32_1 = arith.constant 0 : i32
    return %arg0, %c0_i32, %c0_i32_0 : i32, i32, i32
  }
  func.func @transform_3(%arg0: i32, %arg1: i32) -> (i32, i32) {
    %c1_i32 = arith.constant 1 : i32
    %0 = arith.muli %arg0, %c1_i32 : i32
    %1 = arith.addi %0, %arg1 : i32
    %c0_i32 = arith.constant 0 : i32
    %c0_i32_0 = arith.constant 0 : i32
    return %1, %c0_i32 : i32, i32
  }
}

</mosaic_0001>

<bundles_post_ra>
// kernel: tpu_custom_call.1
= control target key start
LH: loop header
LB: loop body
LE: loop exit
PB: predicated region body
PF: predicated region fallthrough
CT: control target
= control target key end

     0   :  { %vm94_vm0 = vcmask 261120   ;;  %s652_s0 = inlined_call_operand.vmem [shape: f32[64,32], index: 0, kind: input, shape index: {}]   ;;  %s653_s1 = inlined_call_operand.vmem [shape: f32[64,32], index: 1, kind: input, shape index: {}]   ;;  %s654_s2 = inlined_call_operand.hbm [shape: f32[1,1,1], index: 2, kind: output, shape index: {0}]   ;;  %s655_s3 = inlined_call_operand.vmem [shape: f32[64,1], index: 3, kind: output, shape index: {1}]  }
   0x1   :  { %v78_v0 = vld [vmem:[%s652_s0] sm:$0xff]  ;;  %v80_v1 = vld [vmem:[%s652_s0 + $0x10] sm:$0xff]  ;;  %v79_v2 = vld [vmem:[%s652_s0 + $0x8] sm:$0xff] }
   0x2   :  { %v95_v3 = vsel %vm94_vm0, %v78_v0, -inf  ;;  %v101_v4 = vsel %vm94_vm0, %v80_v1, -inf  ;;  %v457_v5 = vld [vmem:[%s652_s0 + $0x18] sm:$0xff]  ;;  %v98_v6 = vsel %vm94_vm0, %v79_v2, -inf }
   0x3   :  { %96 = vmax.xlane.f32.xlu0 %v95_v3  ;;  %102 = vmax.xlane.f32.xlu1 %v101_v4  ;;  %v104_v7 = vsel %vm94_vm0, %v457_v5, -inf }
   0x4   :  { %9 = vsyncpa [#allocation3], 0  ;;  %v465_v8 = vld [vmem:[%s652_s0 + $0x20] sm:$0xff]  ;;  %v470_v9 = vld [vmem:[%s652_s0 + $0x28] sm:$0xff]  ;;  %vm264_vm1 = vcmask 7168   ;;  %vm76_vm2 = vcmask 0  }
   0x5   :  { %v107_v10 = vsel %vm94_vm0, %v465_v8, -inf  ;;  %v110_v11 = vsel %vm94_vm0, %v470_v9, -inf  ;;  %v479_v12 = vld [vmem:[%s652_s0 + $0x30] sm:$0xff]  ;;  %v484_v13 = vld [vmem:[%s652_s0 + $0x38] sm:$0xff]  ;;  %v86_v16 = vld [vmem:[%s653_s1] sm:$0xff]  ;;  %s422_s30 = smov [#allocation2]  }
   0x6   :  { %v113_v14 = vsel %vm94_vm0, %v479_v12, -inf  ;;  %v116_v15 = vsel %vm94_vm0, %v484_v13, -inf  ;;  %v223_v17 = vsel %vm94_vm0, %v86_v16, 0.0  ;;  %v191_v18 = vmul.f32 %v86_v16, %v78_v0  ;;  %v87_v19 = vld [vmem:[%s653_s1 + $0x8] sm:$0xff]  ;;  %v88_v23 = vld [vmem:[%s653_s1 + $0x10] sm:$0xff]  ;;  %s321_s4 = sshll.u32 %s422_s30, 4  ;;  %s322_s4 = int_to_ptr.vmem [resolvable:$true] %s321_s4 }
   0x7   :  { %99 = vmax.xlane.f32.xlu0 %v98_v6  ;;  %105 = vmax.xlane.f32.xlu1 %v104_v7  ;;  %v226_v20 = vsel %vm94_vm0, %v87_v19, 0.0  ;;  %v192_v22 = vmul.f32 %v87_v19, %v79_v2  ;;  %v229_v25 = vsel %vm94_vm0, %v88_v23, 0.0  ;;  %v193_v26 = vmul.f32 %v88_v23, %v80_v1  ;;  %v89_v7 = vld [vmem:[%s653_s1 + $0x18] sm:$0xff]  ;;  %v90_v19 = vld [vmem:[%s653_s1 + $0x20] sm:$0xff]  ;;  %v91_v23 = vld [vmem:[%s653_s1 + $0x28] sm:$0xff]  ;;  %s397_s5 = scalar_lea.vmem %s322_s4, 16  ;;  %p402_p1 = scmp.lt.s32.totalorder %s322_s4, %s322_s4 }
   0x8   :  { %v199_v21 = vsel %vm94_vm0, %v191_v18, 0.0  ;;  %v232_v16 = vsel %vm94_vm0, %v89_v7, 0.0  ;;  %p398_p0 = scmp.ne.s32.totalorder %s322_s4, %s397_s5  ;;  %s401_s6 = scalar_lea.vmem %s322_s4, 32 }
   0x9   :  { %v202_v24 = vsel %vm94_vm0, %v192_v22, 0.0  ;;  %v205_v27 = vsel %vm94_vm0, %v193_v26, 0.0  ;;  %v235_v22 = vsel %vm94_vm0, %v90_v19, 0.0  ;;  %v196_v26 = vmul.f32 %v91_v23, %v470_v9  ;;  %p403_p2 = scmp.lt.s32.totalorder %s401_s6, %s397_s5 }
   0xb   :  { %108 = vmax.xlane.f32.xlu0 %v107_v10  ;;  %111 = vmax.xlane.f32.xlu1 %v110_v11  ;;  %p404_p3 = por %p403_p2, %p402_p1 }
   0xd   :  { %p405_p4 = pnand %p404_p3, %p398_p0 }
   0xf   :  { %114 = vmax.xlane.f32.xlu0 %v113_v14  ;;  %117 = vmax.xlane.f32.xlu1 %v116_v15 }
  0x13   :  { %224 = vadd.xlane.f32.xlu0 %v223_v17  ;;  %227 = vadd.xlane.f32.xlu1 %v226_v20  ;;  %v194_v17 = vmul.f32 %v89_v7, %v457_v5 }
  0x17   :  { %200 = vadd.xlane.f32.xlu0 %v199_v21  ;;  %203 = vadd.xlane.f32.xlu1 %v202_v24  ;;  %v208_v21 = vsel %vm94_vm0, %v194_v17, 0.0 }
  0x1b   :  { %230 = vadd.xlane.f32.xlu0 %v229_v25  ;;  %206 = vadd.xlane.f32.xlu1 %v205_v27  ;;  %v238_v25 = vsel %vm94_vm0, %v91_v23, 0.0  ;;  %v92_v27 = vld [vmem:[%s653_s1 + $0x30] sm:$0xff] }
  0x90   :  { %v505_v28 = vpop.xlane.xlu0 %96  ;;  %v507_v29 = vpop.xlane.xlu1 %102 }
  0x91   :  { %v119_v30 = vsub.f32 %v78_v0, %v505_v28  ;;  %v121_v31 = vsub.f32 %v80_v1, %v507_v29 }
  0x93   :  { %v127_v32 = vmul.f32 1.442695, %v119_v30  ;;  %v131_v33 = vmul.f32 1.442695, %v121_v31  ;;  %v241_v30 = vsel %vm94_vm0, %v92_v27, 0.0  ;;  %v197_v31 = vmul.f32 %v92_v27, %v479_v12 }
  0x94   :  { %v511_v34 = vpop.xlane.xlu0 %99  ;;  %v513_v35 = vpop.xlane.xlu1 %105 }
  0x95   :  { %365 = vpow2.f32 %v127_v32  ;;  %v120_v36 = vsub.f32 %v79_v2, %v511_v34  ;;  %v122_v37 = vsub.f32 %v457_v5, %v513_v35  ;;  %v195_v5 = vmul.f32 %v90_v19, %v465_v8  ;;  %v93_v32 = vld [vmem:[%s653_s1 + $0x38] sm:$0xff] }
  0x96   :  { %367 = vpow2.f32 %v131_v33  ;;  %v244_v33 = vsel %vm94_vm0, %v93_v32, 0.0 }
  0x97   :  { %v129_v38 = vmul.f32 1.442695, %v120_v36  ;;  %v133_v39 = vmul.f32 1.442695, %v122_v37  ;;  %v211_v24 = vsel %vm94_vm0, %v195_v5, 0.0  ;;  %v198_v36 = vmul.f32 %v93_v32, %v484_v13 }
  0x98   :  { %v518_v40 = vpop.xlane.xlu0 %108  ;;  %v520_v41 = vpop.xlane.xlu1 %111 }
  0x99   :  { %369 = vpow2.f32 %v129_v38  ;;  %v123_v42 = vsub.f32 %v465_v8, %v518_v40  ;;  %v124_v43 = vsub.f32 %v470_v9, %v520_v41  ;;  %v214_v8 = vsel %vm94_vm0, %v196_v26, 0.0 }
  0x9a   :  { %371 = vpow2.f32 %v133_v39  ;;  %v217_v9 = vsel %vm94_vm0, %v197_v31, 0.0  ;;  %v220_v37 = vsel %vm94_vm0, %v198_v36, 0.0 }
  0x9b   :  { %v135_v44 = vmul.f32 1.442695, %v123_v42  ;;  %v137_v45 = vmul.f32 1.442695, %v124_v43 }
  0x9c   :  { %v526_v46 = vpop.xlane.xlu0 %114  ;;  %v528_v47 = vpop.xlane.xlu1 %117 }
  0x9d   :  { %373 = vpow2.f32 %v135_v44  ;;  %v125_v48 = vsub.f32 %v479_v12, %v526_v46  ;;  %v126_v49 = vsub.f32 %v484_v13, %v528_v47 }
  0x9e   :  { %375 = vpow2.f32 %v137_v45 }
  0x9f   :  { %v366_v50 = vpop.eup %365  ;;  %v139_v51 = vmul.f32 1.442695, %v125_v48  ;;  %v141_v52 = vmul.f32 1.442695, %v126_v49 }
  0xa0   :  { %v368_v53 = vpop.eup %367  ;;  %v143_v54 = vsel %vm94_vm0, %v366_v50, 0.0  ;;  %v536_v56 = vpop.xlane.xlu0 %224 }
  0xa1   :  { %377 = vpow2.f32 %v139_v51  ;;  %144 = vadd.xlane.f32.xlu0 %v143_v54  ;;  %v149_v55 = vsel %vm94_vm0, %v368_v53, 0.0  ;;  %v540_v61 = vpop.xlane.xlu1 %227 }
  0xa2   :  { %379 = vpow2.f32 %v141_v52 }
  0xa3   :  { %v370_v57 = vpop.eup %369 }
  0xa4   :  { %v372_v58 = vpop.eup %371  ;;  %v146_v59 = vsel %vm94_vm0, %v370_v57, 0.0  ;;  %v542_v62 = vpop.xlane.xlu0 %200 }
  0xa5   :  { %150 = vadd.xlane.f32.xlu0 %v149_v55  ;;  %147 = vadd.xlane.f32.xlu1 %v146_v59  ;;  %v152_v60 = vsel %vm94_vm0, %v372_v58, 0.0  ;;  %v293_v0 = vsub.f32 1.0, %v542_v62  ;;  %v551_v4 = vpop.xlane.xlu1 %203 }
  0xa6   :  { %v294_v10 = vsub.f32 1.0, %v551_v4 }
  0xa7   :  { %v374_v63 = vpop.eup %373  ;;  %301 = vst.msk [vmem:[%s655_s3] sm:$0xff] %vm264_vm1, %v293_v0 }
  0xa8   :  { %v376_v1 = vpop.eup %375  ;;  %v155_v2 = vsel %vm94_vm0, %v374_v63, 0.0  ;;  %302 = vst.msk [vmem:[%s655_s3 + $0x8] sm:$0xff] %vm264_vm1, %v294_v10  ;;  %v231_v38 = vpop.xlane.xlu0 %230 }
  0xa9   :  { %153 = vadd.xlane.f32.xlu1 %v152_v60  ;;  %156 = vadd.xlane.f32.xlu0 %v155_v2  ;;  %v158_v3 = vsel %vm94_vm0, %v376_v1, 0.0  ;;  %v565_v18 = vpop.xlane.xlu1 %206 }
  0xaa   :  { %v295_v20 = vsub.f32 1.0, %v565_v18 }
  0xab   :  { %v378_v6 = vpop.eup %377 }
  0xac   :  { %v380_v11 = vpop.eup %379  ;;  %v161_v14 = vsel %vm94_vm0, %v378_v6, 0.0  ;;  %303 = vst.msk [vmem:[%s655_s3 + $0x10] sm:$0xff] %vm264_vm1, %v295_v20 }
  0xad   :  { %159 = vadd.xlane.f32.xlu1 %v158_v3  ;;  %162 = vadd.xlane.f32.xlu0 %v161_v14  ;;  %v164_v15 = vsel %vm94_vm0, %v380_v11, 0.0 }
  0xb1   :  { %165 = vadd.xlane.f32.xlu1 %v164_v15  ;;  %233 = vadd.xlane.f32.xlu0 %v232_v16 }
  0xb5   :  { %209 = vadd.xlane.f32.xlu1 %v208_v21  ;;  %236 = vadd.xlane.f32.xlu0 %v235_v22 }
  0xb9   :  { %212 = vadd.xlane.f32.xlu1 %v211_v24  ;;  %239 = vadd.xlane.f32.xlu0 %v238_v25 }
  0xbd   :  { %215 = vadd.xlane.f32.xlu1 %v214_v8  ;;  %242 = vadd.xlane.f32.xlu0 %v241_v30 }
  0xc1   :  { %218 = vadd.xlane.f32.xlu1 %v217_v9  ;;  %245 = vadd.xlane.f32.xlu0 %v244_v33 }
  0xc5   :  { %221 = vadd.xlane.f32.xlu1 %v220_v37 }
 0x12e   :  { %v145_v39 = vpop.xlane.xlu0 %144 }
 0x12f   :  { %381 = vlog2.f32 %v145_v39 }
 0x132   :  { %v148_v12 = vpop.xlane.xlu1 %147  ;;  %v151_v42 = vpop.xlane.xlu0 %150 }
 0x133   :  { %383 = vlog2.f32 %v148_v12 }
 0x134   :  { %385 = vlog2.f32 %v151_v42 }
 0x136   :  { %v154_v43 = vpop.xlane.xlu1 %153  ;;  %v157_v44 = vpop.xlane.xlu0 %156 }
 0x137   :  { %387 = vlog2.f32 %v154_v43 }
 0x138   :  { %389 = vlog2.f32 %v157_v44 }
 0x139   :  { %v382_v45 = vpop.eup %381 }
 0x13a   :  { %v168_v48 = vmul.f32 0.6931472, %v382_v45  ;;  %v160_v49 = vpop.xlane.xlu1 %159  ;;  %v163_v13 = vpop.xlane.xlu0 %162 }
 0x13b   :  { %391 = vlog2.f32 %v160_v49 }
 0x13c   :  { %v183_v50 = vadd.f32 %v168_v48, %v505_v28  ;;  %393 = vlog2.f32 %v163_v13 }
 0x13d   :  { %v384_v51 = vpop.eup %383 }
 0x13e   :  { %v386_v52 = vpop.eup %385  ;;  %v248_v53 = vmul.f32 %v536_v56, %v183_v50  ;;  %v170_v54 = vmul.f32 0.6931472, %v384_v51  ;;  %v166_v55 = vpop.xlane.xlu1 %165 }
 0x13f   :  { %v234_v57 = vpop.xlane.xlu0 %233  ;;  %v172_v58 = vmul.f32 0.6931472, %v386_v52  ;;  %395 = vlog2.f32 %v166_v55  ;;  %v421_v55 = vmov 0.0  }
 0x140   :  { %v184_v59 = vadd.f32 %v170_v54, %v511_v34  ;;  %v256_v1 = vsub.f32 %v248_v53, %v542_v62  ;;  %77 = vst.msk [vmem:[#allocation2] sm:$0x1] %vm76_vm2, %v421_v55 }
 0x141   :  { %v388_v60 = vpop.eup %387  ;;  %v185_v63 = vadd.f32 %v172_v58, %v507_v29 }
 0x142   :  { %v390_v0 = vpop.eup %389  ;;  %v249_v28 = vmul.f32 %v540_v61, %v184_v59  ;;  %v174_v2 = vmul.f32 0.6931472, %v388_v60  ;;  %v210_v3 = vpop.xlane.xlu1 %209  ;;  %v265_v19 = vsel %vm264_vm1, %v256_v1, 0.0 }
 0x143   :  { %v237_v6 = vpop.xlane.xlu0 %236  ;;  %v250_v7 = vmul.f32 %v231_v38, %v185_v63  ;;  %v176_v56 = vmul.f32 0.6931472, %v390_v0  ;;  %v296_v10 = vsub.f32 1.0, %v210_v3 }
 0x144   :  { %v257_v11 = vsub.f32 %v249_v28, %v551_v4  ;;  %v186_v14 = vadd.f32 %v174_v2, %v513_v35 }
 0x145   :  { %v392_v15 = vpop.eup %391  ;;  %v258_v34 = vsub.f32 %v250_v7, %v565_v18  ;;  %304 = vst.msk [vmem:[%s655_s3 + $0x18] sm:$0xff] %vm264_vm1, %v296_v10  ;;  %v187_v29 = vadd.f32 %v176_v56, %v518_v40 }
 0x146   :  { %v394_v61 = vpop.eup %393  ;;  %v178_v62 = vmul.f32 0.6931472, %v392_v15  ;;  %v251_v16 = vmul.f32 %v234_v57, %v186_v14  ;;  %v266_v17 = vsel %vm264_vm1, %v257_v11, 0.0  ;;  %v213_v4 = vpop.xlane.xlu1 %212 }
 0x147   :  { %v240_v20 = vpop.xlane.xlu0 %239  ;;  %v180_v35 = vmul.f32 0.6931472, %v394_v61  ;;  %v267_v21 = vadd.f32 %v266_v17, %v265_v19  ;;  %v252_v22 = vmul.f32 %v237_v6, %v187_v29  ;;  %v268_v5 = vsel %vm264_vm1, %v258_v34, 0.0  ;;  %v247_v28 = vld [vmem:[#allocation2] sm:$0x1] }
 0x148   :  { %v259_v18 = vsub.f32 %v251_v16, %v210_v3  ;;  %v297_v23 = vsub.f32 1.0, %v213_v4  ;;  %v188_v24 = vadd.f32 %v178_v62, %v520_v41 }
 0x149   :  { %v396_v25 = vpop.eup %395  ;;  %v269_v40 = vadd.f32 %v268_v5, %v267_v21  ;;  %v260_v26 = vsub.f32 %v252_v22, %v213_v4  ;;  %v189_v27 = vadd.f32 %v180_v35, %v526_v46 }
 0x14a   :  { %v182_v8 = vmul.f32 0.6931472, %v396_v25  ;;  %v270_v30 = vsel %vm264_vm1, %v259_v18, 0.0  ;;  %305 = vst.msk [vmem:[%s655_s3 + $0x20] sm:$0xff] %vm264_vm1, %v297_v23  ;;  %v253_v31 = vmul.f32 %v240_v20, %v188_v24  ;;  %v216_v32 = vpop.xlane.xlu1 %215 }
 0x14b   :  { %v243_v9 = vpop.xlane.xlu0 %242  ;;  %v271_v33 = vadd.f32 %v270_v30, %v269_v40  ;;  %v298_v36 = vsub.f32 1.0, %v216_v32  ;;  %v272_v41 = vsel %vm264_vm1, %v260_v26, 0.0 }
 0x14c   :  { %v261_v37 = vsub.f32 %v253_v31, %v216_v32  ;;  %v254_v46 = vmul.f32 %v243_v9, %v189_v27  ;;  %v190_v39 = vadd.f32 %v182_v8, %v528_v47 }
 0x14d   :  { %v273_v38 = vadd.f32 %v272_v41, %v271_v33  ;;  %306 = vst.msk [vmem:[%s655_s3 + $0x28] sm:$0xff] %vm264_vm1, %v298_v36 }
 0x14e   :  { %v274_v12 = vsel %vm264_vm1, %v261_v37, 0.0  ;;  %v219_v42 = vpop.xlane.xlu1 %218 }
 0x14f   :  { %v246_v43 = vpop.xlane.xlu0 %245  ;;  %v262_v44 = vsub.f32 %v254_v46, %v219_v42  ;;  %v299_v45 = vsub.f32 1.0, %v219_v42  ;;  %v275_v48 = vadd.f32 %v274_v12, %v273_v38 }
 0x150   :  { %v255_v13 = vmul.f32 %v246_v43, %v190_v39 }
 0x151   :  { %v276_v49 = vsel %vm264_vm1, %v262_v44, 0.0  ;;  %307 = vst.msk [vmem:[%s655_s3 + $0x30] sm:$0xff] %vm264_vm1, %v299_v45 }
 0x152   :  { %v222_v50 = vpop.xlane.xlu1 %221  ;;  %v277_v53 = vadd.f32 %v276_v49, %v275_v48 }
 0x153   :  { %v263_v51 = vsub.f32 %v255_v13, %v222_v50  ;;  %v300_v52 = vsub.f32 1.0, %v222_v50 }
 0x155   :  { %308 = vst.msk [vmem:[%s655_s3 + $0x38] sm:$0xff] %vm264_vm1, %v300_v52  ;;  %v278_v47 = vsel %vm264_vm1, %v263_v51, 0.0 }
 0x156   :  { %v279_v54 = vadd.f32 %v278_v47, %v277_v53 }
 0x158   :  { %280 = vadd.xlane.f32.xlu0 %v279_v54 }
 0x1e5   :  { %v281_v57 = vpop.xlane.xlu0 %280 }
 0x1e6   :  { %v282_v58 = vrot.slane %v281_v57, 4 }
 0x1e8   :  { %v283_v59 = vadd.f32 %v282_v58, %v281_v57 }
 0x1ea   :  { %v284_v60 = vrot.slane %v283_v59, 2 }
 0x1ec   :  { %v285_v63 = vadd.f32 %v284_v60, %v283_v59 }
 0x1ee   :  { %v286_v0 = vrot.slane %v285_v63, 1 }
 0x1f0   :  { %v287_v1 = vadd.f32 %v286_v0, %v285_v63 }
 0x1f2   :  { %361 = vpush %v287_v1 }
 0x223   :  { %s362_s3 = spop %361 }
 0x224   :  { %v289_v2 = vstv %s362_s3 }
 0x225   :  { %v290_v3 = vadd.f32 %v289_v2, %v247_v28 }
 0x227   :  { %292 = vst.msk [vmem:[#allocation2] sm:$0x1] %vm76_vm2, %v290_v3 }
 0x228   :  { %408 = shalt.err (!%p405_p4)
}
 0x229   :  { %s409_s9 = scalar_lea.hbm %s654_s2, 16 }
 0x22a   :  { %p410_p5 = scmp.ne.s32.totalorder %s654_s2, %s409_s9  ;;  %p413_p6 = scmp.lt.u32.totalorder %s409_s9, %s654_s2 }
 0x22c   :  { %p415_p7 = pnand %p413_p6, %p410_p5 }
 0x22e   :  { %418 = shalt.err (!%p415_p7)
}
 0x22f   :  { %324 = dma.vmem_to_hbm [thread:$0]  %s322_s4, 16, %s654_s2, [#allocation3]  }
 0x230   :  { %419 = dma.done.wait [#allocation3], 16  }
 0x231   :  { %420 = vsyncadd [#allocation3], 4294967280 }
 0x232   :  { %340 = vsyncpa [#allocation3], 1 }

</bundles_post_ra>
